<compile_context>
chip_gen: v5e
topology: v5e:2x2
jax: 0.10.0
libtpu: 0.0.40
codegen_flags: <defaults>
</compile_context>

<pallas_src>
import functools

import jax
import jax.numpy as jnp
from jax.experimental import pallas as pl
from jax.experimental.pallas import tpu as pltpu


def portfolio_kernel(x_ref, w_ref, y_ref, *, n_assets, n_rep):
    """x_ref: (TM, n_rep*n_assets) packed log returns, w_ref: (1, n_assets)
    logits, y_ref: (n_rep, TM) lane-dense portfolio returns."""
    # Numerically-stable softmax over the asset axis (exact, matches reference).
    w = w_ref[...].astype(jnp.float32)                        # (1, n)
    m = jnp.max(w, axis=-1, keepdims=True)
    e = jnp.exp(w - m)
    denom = jnp.sum(e, axis=-1, keepdims=True)
    p = e * pl.reciprocal(denom, approx=False)                # (1, n)

    # Weighted row-sum per n-wide lane segment (VPU mul + XLU reduce, exact
    # f32; deliberately NOT an MXU matvec).
    cols = []
    for c in range(n_rep):
        seg = x_ref[:, c * n_assets:(c + 1) * n_assets].astype(jnp.float32)
        cols.append(jnp.sum(seg * p, axis=-1, keepdims=True))  # (TM, 1)
    res = cols[0] if n_rep == 1 else jnp.concatenate(cols, axis=-1)  # (TM, k)

    # Lane-dense store: (TM, k) sublane-major -> (k, TM) lane-major via the
    # XLU transpose, so writeback is wide unmasked vst + a contiguous DMA.
    y_ref[...] = jnp.transpose(res).astype(y_ref.dtype)


def _vmem_budget_bytes():
    """Per-generation VMEM budget: ~3/4 of physical VMEM, capped at 96 MiB.
    v7x: 64 MiB/TC -> 48 MiB; v5e/v6e: 128 MiB -> 96 MiB."""
    cap = 64 * 1024 * 1024                                    # conservative fallback
    try:
        cap = int(pltpu.get_tpu_info().vmem_capacity_bytes)
    except Exception:
        pass
    return min((cap * 3) // 4, 96 * 1024 * 1024)


def _pick_tile_rows(t_p, n_p, itemsize, vmem_budget):
    """Pick the packed-time tile TM from the *lane-padded* row width so the
    buffers stay inside the per-generation VMEM budget, targeting multi-MiB x
    tiles (per-grid-step overhead ~0.35us) and >= 2 grid steps for v7x."""
    n_pad = pl.cdiv(n_p, 128) * 128
    # Per packed row: up to 3 x DMA buffers (input dtype) + ~2 f32 working
    # temporaries on a segment + the double-buffered (8, TM) f32 output block.
    row_bytes = 3 * n_pad * itemsize + 2 * n_pad * 4 + 2 * 8 * 4
    tm = vmem_budget // row_bytes
    # ~8 MiB per x buffer is plenty to amortize per-step overhead.
    tm = min(tm, (8 * 1024 * 1024) // (n_pad * itemsize))
    # Keep >= 2 grid steps when t is large so both v7x TensorCores get work.
    if t_p >= 256:
        tm = min(tm, max(128, ((t_p + 1) // 2 // 128) * 128))
    return max(int(tm), 1)


def _legalize_tile(tm, t_p):
    """Blocks smaller than the array must keep (8,128)-divisible minor dims:
    TM is second-minor of the x block and minor of the (k, TM) output block."""
    tm = min(int(tm), t_p)
    if tm >= t_p:
        return t_p
    tm = (tm // 128) * 128
    return t_p if tm == 0 else tm


def portfolio_forward(x, w, tile_rows=None):
    """Pallas fused softmax + matvec: y = x @ softmax(w); returns shape (t,)."""
    t, n = x.shape
    w2d = jnp.asarray(w, jnp.float32).reshape(1, n)

    # Lane-pack small n: fold k consecutive time rows into one <=128-lane row
    # (free: the reshape is row-major contiguous, no data movement).
    k = 1
    if n <= 64:
        k = max(1, 128 // n)
        while k > 1 and t % k != 0:
            k -= 1
    t_p, n_p = t // k, n * k
    x_p = x if k == 1 else x.reshape(t_p, n_p)

    budget = _vmem_budget_bytes()
    if tile_rows is None:
        tile_rows = _pick_tile_rows(t_p, n_p, x.dtype.itemsize, budget)
    tm = _legalize_tile(tile_rows, t_p)
    grid_steps = pl.cdiv(t_p, tm)

    # Triple-buffer x when tiles are small (per-step compute ~0) so DMA issue
    # latency / jitter stays hidden; skip when it cannot help.
    x_tile_bytes = tm * (pl.cdiv(n_p, 128) * 128) * x.dtype.itemsize
    triple_buffer = grid_steps >= 3 and x_tile_bytes <= (1 << 20)

    def _x_spec():
        if triple_buffer:
            try:
                return pl.BlockSpec((tm, n_p), lambda i: (i, 0),
                                    pipeline_mode=pl.Buffered(3))
            except Exception:
                pass
        return pl.BlockSpec((tm, n_p), lambda i: (i, 0))

    kernel = functools.partial(portfolio_kernel, n_assets=n, n_rep=k)
    cost = pl.CostEstimate(
        flops=2 * t * n,
        transcendentals=n,                                     # softmax exp
        bytes_accessed=t * n * x.dtype.itemsize + t * 4 + n * 4,
    )

    y2d = pl.pallas_call(
        kernel,
        out_shape=jax.ShapeDtypeStruct((k, t_p), jnp.float32),
        grid_spec=pltpu.PrefetchScalarGridSpec(
            num_scalar_prefetch=0,
            grid=(grid_steps,),
            in_specs=[
                _x_spec(),                                     # streamed over time
                pl.BlockSpec((1, n), lambda i: (0, 0)),        # resident logits
            ],
            out_specs=pl.BlockSpec((k, tm), lambda i: (0, i)),  # lane-dense rows
        ),
        compiler_params=pltpu.CompilerParams(
            dimension_semantics=("parallel",),                 # independent rows
            vmem_limit_bytes=int(budget),
        ),
        cost_estimate=cost,
    )(x_p, w2d)

    # Undo the packed / transposed layout (tiny: t * 4 bytes of plumbing).
    return y2d.reshape(t) if k == 1 else y2d.T.reshape(t)


def initialize_params(x):
    """Mirror Model.initialize_params: w = -inf everywhere, 1/num_valid on
    columns that contain no NaNs."""
    valid = jnp.all(~jnp.isnan(x), axis=0)                     # (n,)
    num_valid = jnp.sum(valid).astype(jnp.float32)
    return jnp.where(valid, 1.0 / num_valid, -jnp.inf).astype(jnp.float32)


def reference_forward(x, w):
    p = jax.nn.softmax(w.astype(jnp.float32))
    return jnp.sum(x.astype(jnp.float32) * p[None, :], axis=-1)


if __name__ == "__main__":
    root = jax.random.PRNGKey(0)

    # TODO(synk): the use_k=True branch (topk asset selection sized by a
    # learned scalar k, plus the host-side print) needs a data-dependent-size
    # gather; only the default use_k=False forward is implemented here.

    def run_case(idx, t, n, tile_rows=None, dtype=jnp.float32):
        key = jax.random.fold_in(root, idx)
        x = (0.01 * jax.random.normal(key, (t, n), dtype=jnp.float32)).astype(dtype)
        w = initialize_params(x)
        y = portfolio_forward(x, w, tile_rows=tile_rows)
        jax.block_until_ready(y)
        y_ref = reference_forward(x, w)
        assert y.shape == (t,), (idx, y.shape)
        assert jnp.allclose(y, y_ref, atol=1e-6, rtol=1e-6), (idx, t, n, dtype)

    # Module-spec small shape: packed k=4, single full-extent block.
    run_case(0, t=8, n=32)
    # Packed path, auto tiling -> 2 parallel grid steps (t_p=256, TM=128).
    run_case(1, t=1024, n=32)
    # Non-divisible packed t (t_p=250, TM=128): partial last tile, masked writeback.
    run_case(2, t=1000, n=32, tile_rows=128)
    # Unpacked n>64 path, auto tiling -> lane-dense (1, TM) output blocks.
    run_case(3, t=512, n=200)
    # Many small tiles -> pl.Buffered(3) triple-buffered x stream.
    run_case(4, t=8192, n=32, tile_rows=128)
    # bf16 inputs: DMA'd at half width, upcast per segment inside the kernel.
    run_case(5, t=1024, n=32, dtype=jnp.bfloat16)

    print("KERNEL_OK")
</pallas_src>

<mosaic_0001>
module attributes {stable_mosaic.version = 11 : i64} {
  func.func @portfolio_kernel(%arg0: i32, %arg1: memref<2x128xf32, #tpu.memory_space<vmem>>, %arg2: memref<1x32xf32, #tpu.memory_space<vmem>>, %arg3: memref<4x2xf32, #tpu.memory_space<vmem>>) attributes {dimension_semantics = [#tpu.dimension_semantics<parallel>], iteration_bounds = array<i64: 1>, scalar_prefetch = 0 : i64, scratch_operands = 0 : i64, tpu.core_type = #tpu.core_type<tc>, window_params = [{transform_indices = @transform_0, window_bounds = array<i64: 2, 128>}, {pipeline_mode = #tpu.pipeline_mode<synchronous>, transform_indices = @transform_1, window_bounds = array<i64: 1, 32>}, {transform_indices = @transform_2, window_bounds = array<i64: 4, 2>}]} {
    %c0 = arith.constant 0 : index
    %c0_0 = arith.constant 0 : index
    %0 = vector.load %arg2[%c0, %c0_0] : memref<1x32xf32, #tpu.memory_space<vmem>>, vector<1x32xf32>
    %cst = arith.constant dense<0xFF800000> : vector<1xf32>
    %1 = vector.multi_reduction <maximumf>, %0, %cst [1] : vector<1x32xf32> to vector<1xf32>
    %2 = vector.shape_cast %1 : vector<1xf32> to vector<1x1xf32>
    %3 = vector.broadcast %2 : vector<1x1xf32> to vector<1x32xf32>
    %4 = arith.subf %0, %3 : vector<1x32xf32>
    %5 = math.exp %4 : vector<1x32xf32>
    %cst_1 = arith.constant dense<0.000000e+00> : vector<1xf32>
    %6 = vector.multi_reduction <add>, %5, %cst_1 [1] : vector<1x32xf32> to vector<1xf32>
    %7 = vector.shape_cast %6 : vector<1xf32> to vector<1x1xf32>
    %8 = tpu.reciprocal %7 : vector<1x1xf32> -> vector<1x1xf32>
    %9 = vector.broadcast %8 : vector<1x1xf32> to vector<1x32xf32>
    %10 = arith.mulf %5, %9 : vector<1x32xf32>
    %c0_2 = arith.constant 0 : index
    %c0_3 = arith.constant 0 : index
    %11 = vector.load %arg1[%c0_2, %c0_3] : memref<2x128xf32, #tpu.memory_space<vmem>>, vector<2x32xf32>
    %12 = vector.broadcast %10 : vector<1x32xf32> to vector<2x32xf32>
    %13 = arith.mulf %11, %12 : vector<2x32xf32>
    %cst_4 = arith.constant dense<0.000000e+00> : vector<2xf32>
    %14 = vector.multi_reduction <add>, %13, %cst_4 [1] : vector<2x32xf32> to vector<2xf32>
    %15 = vector.shape_cast %14 : vector<2xf32> to vector<2x1xf32>
    %c0_5 = arith.constant 0 : index
    %c32 = arith.constant 32 : index
    %16 = vector.load %arg1[%c0_5, %c32] : memref<2x128xf32, #tpu.memory_space<vmem>>, vector<2x32xf32>
    %17 = vector.broadcast %10 : vector<1x32xf32> to vector<2x32xf32>
    %18 = arith.mulf %16, %17 : vector<2x32xf32>
    %cst_6 = arith.constant dense<0.000000e+00> : vector<2xf32>
    %19 = vector.multi_reduction <add>, %18, %cst_6 [1] : vector<2x32xf32> to vector<2xf32>
    %20 = vector.shape_cast %19 : vector<2xf32> to vector<2x1xf32>
    %c0_7 = arith.constant 0 : index
    %c64 = arith.constant 64 : index
    %21 = vector.load %arg1[%c0_7, %c64] : memref<2x128xf32, #tpu.memory_space<vmem>>, vector<2x32xf32>
    %22 = vector.broadcast %10 : vector<1x32xf32> to vector<2x32xf32>
    %23 = arith.mulf %21, %22 : vector<2x32xf32>
    %cst_8 = arith.constant dense<0.000000e+00> : vector<2xf32>
    %24 = vector.multi_reduction <add>, %23, %cst_8 [1] : vector<2x32xf32> to vector<2xf32>
    %25 = vector.shape_cast %24 : vector<2xf32> to vector<2x1xf32>
    %c0_9 = arith.constant 0 : index
    %c96 = arith.constant 96 : index
    %26 = vector.load %arg1[%c0_9, %c96] : memref<2x128xf32, #tpu.memory_space<vmem>>, vector<2x32xf32>
    %27 = vector.broadcast %10 : vector<1x32xf32> to vector<2x32xf32>
    %28 = arith.mulf %26, %27 : vector<2x32xf32>
    %cst_10 = arith.constant dense<0.000000e+00> : vector<2xf32>
    %29 = vector.multi_reduction <add>, %28, %cst_10 [1] : vector<2x32xf32> to vector<2xf32>
    %30 = vector.shape_cast %29 : vector<2xf32> to vector<2x1xf32>
    %31 = tpu.concatenate %15, %20, %25, %30 in 1 : vector<2x1xf32>, vector<2x1xf32>, vector<2x1xf32>, vector<2x1xf32> -> vector<2x4xf32>
    %32 = tpu.transpose %31, [1, 0] : vector<2x4xf32> -> vector<4x2xf32>
    %c0_11 = arith.constant 0 : index
    %c0_12 = arith.constant 0 : index
    %33 = vector.load %arg3[%c0_11, %c0_12] : memref<4x2xf32, #tpu.memory_space<vmem>>, vector<4x2xf32>
    tpu.vector_store %arg3[%c0_11, %c0_12], %32 {strides = array<i32>} : memref<4x2xf32, #tpu.memory_space<vmem>>, vector<4x2xf32>,
    return
  }
  func.func @transform_0(%arg0: i32) -> (i32, i32) {
    %c0_i32 = arith.constant 0 : i32
    %c0_i32_0 = arith.constant 0 : i32
    return %arg0, %c0_i32 : i32, i32
  }
  func.func @transform_1(%arg0: i32) -> (i32, i32) {
    %c0_i32 = arith.constant 0 : i32
    %c0_i32_0 = arith.constant 0 : i32
    %c0_i32_1 = arith.constant 0 : i32
    return %c0_i32, %c0_i32_0 : i32, i32
  }
  func.func @transform_2(%arg0: i32) -> (i32, i32) {
    %c0_i32 = arith.constant 0 : i32
    %c0_i32_0 = arith.constant 0 : i32
    return %c0_i32, %arg0 : i32, i32
  }
}

</mosaic_0001>

<bundles_post_ra>
// kernel: tpu_custom_call.1
= control target key start
LH: loop header
LB: loop body
LE: loop exit
PB: predicated region body
PF: predicated region fallthrough
CT: control target
= control target key end

     0   :  { %7 = vsyncpa [#allocation3], 0  ;;  %s244_s0 = inlined_call_operand.hbm [shape: f32[2,128], index: 0, kind: input, shape index: {}]   ;;  %s245_s1 = inlined_call_operand.hbm [shape: f32[1,32], index: 1, kind: input, shape index: {}]   ;;  %s246_s2 = inlined_call_operand.vmem [shape: f32[4,2], index: 2, kind: output, shape index: {}]  }
   0x1   :  { %s14_s11 = sshll.u32 %s244_s0, 4  ;;  %s15_s11 = int_to_ptr.hbm [resolvable:$true] %s14_s11 }
   0x2   :  { %8 = vsyncpa [#allocation5], 0  ;;  %s215_s12 = smov [#allocation2]   ;;  %s25_s16 = sshll.u32 %s245_s1, 4  ;;  %s26_s16 = int_to_ptr.hbm [resolvable:$true] %s25_s16 }
   0x3   :  { %s16_s13 = sshll.u32 %s215_s12, 4  ;;  %s216_s17 = smov [#allocation4]   ;;  %s17_s13 = int_to_ptr.vmem [resolvable:$true] %s16_s13 }
   0x4   :  { %19 = dma.hbm_to_vmem [thread:$0]  %s15_s11, 32, %s17_s13, [#allocation3]  }
   0x5   :  { %s27_s18 = sshll.u32 %s216_s17, 4  ;;  %s28_s18 = int_to_ptr.vmem [resolvable:$true] %s27_s18 }
   0x6   :  { %30 = dma.hbm_to_vmem [thread:$0]  %s26_s16, 16, %s28_s18, [#allocation5]  }
   0x7   :  { %211 = dma.done.wait [#allocation3], 32  }
   0x8   :  { %212 = vsyncadd [#allocation3], 4294967264 }
   0x9   :  { %213 = dma.done.wait [#allocation5], 16  }
   0xa   :  { %214 = vsyncadd [#allocation5], 4294967280  ;;  %vm40_vm0 = vcmask 253952   ;;  %v39_v0 = vld [vmem:[#allocation4] sm:$0x1]  ;;  %s217_s0 = smov 96  }
   0xb   :  { %v41_v1 = vsel %vm40_vm0, %v39_v0, -inf  ;;  %v65_v19 = vld [vmem:[#allocation2] sm:$0x3]  ;;  %s218_s1 = smov 32   ;;  %s219_s19 = smov 64   ;;  %vm70_vm5 = vcmask 254976  }
   0xc   :  { %42 = vmax.xlane.f32.xlu0 %v41_v1  ;;  %vm107_vm6 = vcmask 7168   ;;  %vm109_vm7 = vcmask 15360   ;;  %vm111_vm8 = vcmask 23552   ;;  %vm145_vm9 = vcmask 11264  }
  0x7f   :  { %v43_v2 = vpop.xlane.xlu0 %42 }
  0x80   :  { %v44_v3 = vsub.f32 %v39_v0, %v43_v2 }
  0x82   :  { %v45_v4 = vmul.f32 1.442695, %v44_v3 }
  0x84   :  { %159 = vpow2.f32 %v45_v4 }
  0x8a   :  { %v160_v5 = vpop.eup %159 }
  0x8b   :  { %v47_v6 = vsel %vm40_vm0, %v160_v5, 0.0 }
  0x8c   :  { %48 = vadd.xlane.f32.xlu0 %v47_v6 }
  0xff   :  { %v49_v7 = vpop.xlane.xlu0 %48 }
 0x100   :  { %161 = vrcp.f32 %v49_v7  ;;  %v61_v11 = vand.u32 2147483648, %v49_v7  ;;  %v59_v13 = vand.u32 2147483647, %v49_v7  ;;  %vm55_vm2 = vweird.f32 %v49_v7 }
 0x102   :  { %v62_v15 = vor.u32 1.1754944e-38, %v61_v11  ;;  %vm60_vm4 = vcmp.eq.f32.partialorder %v59_v13, 8.507059e+37 }
 0x106   :  { %v162_v8 = vpop.eup %161 }
 0x107   :  { %v51_v9 = vmul.f32 %v162_v8, %v49_v7  ;;  %vm56_vm1 = vweird.f32 %v162_v8 }
 0x108   :  { %vm57_vm3 = vmor %vm55_vm2, %vm56_vm1 }
 0x109   :  { %v52_v10 = vsub.f32 1.0, %v51_v9 }
 0x10b   :  { %v53_v12 = vmul.f32 %v162_v8, %v52_v10 }
 0x10d   :  { %v54_v14 = vadd.f32 %v162_v8, %v53_v12 }
 0x10f   :  { %v58_v16 = vsel %vm57_vm3, %v162_v8, %v54_v14 }
 0x110   :  { %v63_v17 = vsel %vm60_vm4, %v62_v15, %v58_v16 }
 0x111   :  { %v64_v18 = vmul.f32 %v160_v5, %v63_v17 }
 0x113   :  { %v67_v20 = vperm.slane %v64_v18, 0 }
 0x115   :  { %96 = vrot.lane.b32.xlu2 %v67_v20, %s217_s0  ;;  %74 = vrot.lane.b32.xlu1 %v67_v20, %s218_s1  ;;  %v69_v21 = vmul.f32 %v67_v20, %v65_v19 }
 0x117   :  { %v71_v28 = vsel %vm70_vm5, %v69_v21, 0.0 }
 0x11d   :  { %85 = vrot.lane.b32.xlu1 %v67_v20, %s219_s19 }
 0x16f   :  { %v97_v22 = vpop.permute.xlu2 %96 }
 0x170   :  { %v99_v23 = vmul.f32 %v97_v22, %v65_v19 }
 0x172   :  { %101 = vrot.lane.b32.xlu1 %v99_v23, %s218_s1 }
 0x187   :  { %v75_v24 = vpop.permute.xlu1 %74 }
 0x188   :  { %v77_v25 = vmul.f32 %v75_v24, %v65_v19 }
 0x18a   :  { %79 = vrot.lane.b32.xlu2 %v77_v25, %s217_s0 }
 0x18f   :  { %v86_v26 = vpop.permute.xlu1 %85 }
 0x190   :  { %v88_v27 = vmul.f32 %v86_v26, %v65_v19 }
 0x192   :  { %90 = vrot.lane.b32.xlu0 %v88_v27, %s219_s19 }
 0x1b3   :  { %72 = vadd.xlane.f32.xlu2 %v71_v28 }
 0x1e4   :  { %v80_v29 = vpop.permute.xlu2 %79  ;;  %v102_v30 = vpop.permute.xlu1 %101 }
 0x1e5   :  { %v82_v31 = vsel %vm70_vm5, %v80_v29, 0.0  ;;  %v104_v32 = vsel %vm70_vm5, %v102_v30, 0.0 }
 0x1e6   :  { %83 = vadd.xlane.f32.xlu1 %v82_v31  ;;  %105 = vadd.xlane.f32.xlu2 %v104_v32 }
 0x204   :  { %v91_v33 = vpop.permute.xlu0 %90 }
 0x205   :  { %v93_v34 = vsel %vm70_vm5, %v91_v33, 0.0 }
 0x206   :  { %94 = vadd.xlane.f32.xlu0 %v93_v34 }
 0x226   :  { %v73_v35 = vpop.xlane.xlu2 %72 }
 0x259   :  { %v84_v36 = vpop.xlane.xlu1 %83  ;;  %v106_v39 = vpop.xlane.xlu2 %105 }
 0x25a   :  { %v108_v37 = vsel %vm107_vm6, %v73_v35, %v84_v36 }
 0x279   :  { %v95_v38 = vpop.xlane.xlu0 %94 }
 0x27a   :  { %v110_v40 = vsel %vm109_vm7, %v108_v37, %v95_v38 }
 0x27b   :  { %v112_v41 = vsel %vm111_vm8, %v110_v40, %v106_v39 }
 0x27c   :  { %113 = vxpose.xlu2.b32.start.end [1/1] (short) (narrow) %v112_v41, 8 }
 0x315   :  { %v129_v42 = vpop.trf.xlu2 }
 0x316   :  { %146 = vst.msk [vmem:[%s246_s2] sm:$0xf] %vm145_vm9, %v129_v42 }
 0x317   :  { %151 = vsyncpa [#allocation3], 1 }
 0x318   :  { %152 = vsyncpa [#allocation5], 1 }

</bundles_post_ra>
